<compile_context>
chip_gen: v5e
topology: v5e:2x2
jax: 0.10.0
libtpu: 0.0.40
codegen_flags: <defaults>
</compile_context>

<pallas_src>
import jax
import jax.numpy as jnp
from jax.experimental import pallas as pl
from jax.experimental.pallas import tpu as pltpu


def _sublane_align(dtype):
    # f32 -> 8, bf16 -> 16 (rows per packed vreg sublane group).
    return max(8, 32 // jnp.dtype(dtype).itemsize)


def _pick_tile(n, cap, align):
    """Largest tile <= cap that divides n and is a multiple of align.
    If n <= cap the full dimension is used (always legal)."""
    if n <= cap:
        return n
    t = (cap // align) * align
    while t >= align:
        if n % t == 0:
            return t
        t -= align
    return n  # fall back to the full (untiled) dimension


# ----------------------- tiled linear:  y = x @ w^T -------------------------

def _linear_kernel(x_ref, w_ref, o_ref, acc_ref):
    k = pl.program_id(2)

    @pl.when(k == 0)
    def _():
        acc_ref[...] = jnp.zeros(acc_ref.shape, jnp.float32)

    acc_ref[...] += jax.lax.dot_general(
        x_ref[...], w_ref[...],
        dimension_numbers=(((1,), (1,)), ((), ())),   # contract K of both
        preferred_element_type=jnp.float32)

    @pl.when(k == pl.num_programs(2) - 1)
    def _():
        o_ref[...] = acc_ref[...].astype(o_ref.dtype)


def linear_pallas(x, w, out_dtype=None):
    """F.linear: x (M, K) @ w (N, K)^T -> (M, N).  w stays in PyTorch layout."""
    M, K = x.shape
    N, K2 = w.shape
    assert K == K2
    out_dtype = x.dtype if out_dtype is None else out_dtype
    TM = _pick_tile(M, 512, _sublane_align(x.dtype))
    TN = _pick_tile(N, 512, 128)
    TK = _pick_tile(K, 1024, 128)
    grid = (M // TM, N // TN, K // TK)
    cost = pl.CostEstimate(
        flops=2 * M * N * K,
        transcendentals=0,
        bytes_accessed=int(M * K * (N // TN) * x.dtype.itemsize
                           + N * K * (M // TM) * w.dtype.itemsize
                           + M * N * jnp.dtype(out_dtype).itemsize))
    return pl.pallas_call(
        _linear_kernel,
        out_shape=jax.ShapeDtypeStruct((M, N), out_dtype),
        grid=grid,
        in_specs=[pl.BlockSpec((TM, TK), lambda i, j, k: (i, k)),
                  pl.BlockSpec((TN, TK), lambda i, j, k: (j, k))],
        out_specs=pl.BlockSpec((TM, TN), lambda i, j, k: (i, j)),
        scratch_shapes=[pltpu.VMEM((TM, TN), jnp.float32)],
        compiler_params=pltpu.CompilerParams(
            dimension_semantics=("parallel", "parallel", "arbitrary"),
            vmem_limit_bytes=32 * 1024 * 1024),
        cost_estimate=cost,
    )(x, w)


# -------- pre-pass: per-head rms + rope (+0.12 into q) + lambda-mix of v -----

def _prep_body(lam_ref, q_ref, k_ref, v_ref, ve_ref, cos_ref, sin_ref,
               qo_ref, ko_ref, vo_ref):
    eps = jnp.float32(jnp.finfo(jnp.float32).eps)
    half = cos_ref.shape[-1]
    cos = cos_ref[...]
    sin = sin_ref[...]

    def rms(x):
        return x * jax.lax.rsqrt(jnp.mean(x * x, axis=-1, keepdims=True) + eps)

    def rope(x):
        x1 = x[:, :half]
        x2 = x[:, half:]
        return jnp.concatenate([x1 * cos + x2 * sin, x2 * cos - x1 * sin],
                               axis=-1)

    # q: rms + rope; fold the 0.12 softmax scale into q once.
    q = rope(rms(q_ref[...].astype(jnp.float32))) * jnp.float32(0.12)
    k = rope(rms(k_ref[...].astype(jnp.float32)))
    v = lam_ref[0] * v_ref[...].astype(jnp.float32)
    if ve_ref is not None:
        v = v + lam_ref[1] * ve_ref[...].astype(jnp.float32)

    qo_ref[...] = q.astype(qo_ref.dtype)
    ko_ref[...] = k.astype(ko_ref.dtype)
    vo_ref[...] = v.astype(vo_ref.dtype)


def _prep_kernel_ve(lam_ref, q_ref, k_ref, v_ref, ve_ref, cos_ref, sin_ref,
                    qo_ref, ko_ref, vo_ref):
    _prep_body(lam_ref, q_ref, k_ref, v_ref, ve_ref, cos_ref, sin_ref,
               qo_ref, ko_ref, vo_ref)


def _prep_kernel_no_ve(lam_ref, q_ref, k_ref, v_ref, cos_ref, sin_ref,
                       qo_ref, ko_ref, vo_ref):
    _prep_body(lam_ref, q_ref, k_ref, v_ref, None, cos_ref, sin_ref,
               qo_ref, ko_ref, vo_ref)


def preprocess_qkv(qkv, ve, cos, sin, lambdas, *, num_heads, out_dtype):
    """qkv: (B, T, 3*H*D); ve: (B, T, H*D) or None; cos/sin: (T, D//2);
    lambdas: (2,) f32 in SMEM.  Returns (q_pre, k_pre, v_pre), each (B,T,H*D).
    Heads are lane-aligned D-wide column slices of (B, T, 3*H*D) -- no HBM
    transposes anywhere."""
    B, T, width = qkv.shape
    H = num_heads
    D = width // (3 * H)
    half = D // 2
    assert cos.shape == (T, half) and sin.shape == (T, half)

    TT = _pick_tile(T, 256, _sublane_align(out_dtype))
    grid = (B, H, T // TT)

    q_in = pl.BlockSpec((None, TT, D), lambda b, h, t: (b, t, h))
    k_in = pl.BlockSpec((None, TT, D), lambda b, h, t: (b, t, H + h))
    v_in = pl.BlockSpec((None, TT, D), lambda b, h, t: (b, t, 2 * H + h))
    ve_in = pl.BlockSpec((None, TT, D), lambda b, h, t: (b, t, h))
    tbl = pl.BlockSpec((TT, half), lambda b, h, t: (t, 0))
    out_spec = pl.BlockSpec((None, TT, D), lambda b, h, t: (b, t, h))
    lam_spec = pl.BlockSpec(memory_space=pltpu.MemorySpace.SMEM)

    if ve is None:
        kernel = _prep_kernel_no_ve
        in_specs = [lam_spec, q_in, k_in, v_in, tbl, tbl]
        args = (lambdas, qkv, qkv, qkv, cos, sin)
    else:
        kernel = _prep_kernel_ve
        in_specs = [lam_spec, q_in, k_in, v_in, ve_in, tbl, tbl]
        args = (lambdas, qkv, qkv, qkv, ve, cos, sin)

    itm = jnp.dtype(qkv.dtype).itemsize
    otm = jnp.dtype(out_dtype).itemsize
    n_in = 3 + (0 if ve is None else 1)
    cost = pl.CostEstimate(
        flops=14 * B * T * H * D,
        transcendentals=2 * B * T * H,
        bytes_accessed=int(n_in * B * T * H * D * itm
                           + 2 * B * H * T * half * 4
                           + 3 * B * T * H * D * otm))

    out_shapes = tuple(jax.ShapeDtypeStruct((B, T, H * D), out_dtype)
                       for _ in range(3))
    return pl.pallas_call(
        kernel,
        out_shape=out_shapes,
        grid=grid,
        in_specs=in_specs,
        out_specs=(out_spec, out_spec, out_spec),
        compiler_params=pltpu.CompilerParams(
            dimension_semantics=("parallel", "parallel", "parallel"),
            vmem_limit_bytes=32 * 1024 * 1024),
        cost_estimate=cost,
    )(*args)


# ------------------------- flash attention (no mask) -------------------------

def _flash_kernel(q_ref, k_ref, v_ref, o_ref, m_sc, l_sc, acc_sc):
    kv = pl.program_id(3)

    @pl.when(kv == 0)
    def _():
        m_sc[...] = jnp.full(m_sc.shape, -jnp.inf, jnp.float32)
        l_sc[...] = jnp.zeros(l_sc.shape, jnp.float32)
        acc_sc[...] = jnp.zeros(acc_sc.shape, jnp.float32)

    # scores for this (q-tile, kv-tile): (TQ, TK) on the MXU, f32 accumulation.
    # q is already rms-normed, roped, and scaled by 0.12 (pre-pass).
    s = jax.lax.dot_general(
        q_ref[...], k_ref[...],
        dimension_numbers=(((1,), (1,)), ((), ())),
        preferred_element_type=jnp.float32)

    # online softmax update (NO mask: matches the module's non-flex fallback).
    m_prev = m_sc[...]
    m_new = jnp.maximum(m_prev, jnp.max(s, axis=-1, keepdims=True))
    alpha = jnp.exp(m_prev - m_new)
    p = jnp.exp(s - m_new)
    l_sc[...] = alpha * l_sc[...] + jnp.sum(p, axis=-1, keepdims=True)
    acc_sc[...] = alpha * acc_sc[...] + jnp.dot(
        p.astype(v_ref.dtype), v_ref[...], preferred_element_type=jnp.float32)
    m_sc[...] = m_new

    @pl.when(kv == pl.num_programs(3) - 1)
    def _():
        # exact divide, finalize-only (avoids approx-reciprocal bias).
        o_ref[...] = (acc_sc[...] / l_sc[...]).astype(o_ref.dtype)


def flash_attention(q, k, v, *, num_heads, out_dtype):
    """q, k, v: preprocessed (B, T, H*D).  Returns y: (B, T, H*D)."""
    B, T, width = q.shape
    H = num_heads
    D = width // H
    # TODO(synk): head_dim=64 models would need a packed-lane head layout.
    assert D % 128 == 0, "head_dim must be a multiple of the 128-lane width"

    al = _sublane_align(q.dtype)
    TQ = _pick_tile(T, 256, al)
    TK = _pick_tile(T, 256, al)
    nq, nk = T // TQ, T // TK
    grid = (B, H, nq, nk)   # kv (reduction) axis last

    q_spec = pl.BlockSpec((None, TQ, D), lambda b, h, qi, kv: (b, qi, h))
    k_spec = pl.BlockSpec((None, TK, D), lambda b, h, qi, kv: (b, kv, h))
    v_spec = pl.BlockSpec((None, TK, D), lambda b, h, qi, kv: (b, kv, h))
    o_spec = pl.BlockSpec((None, TQ, D), lambda b, h, qi, kv: (b, qi, h))

    scratch = [pltpu.VMEM((TQ, 1), jnp.float32),   # running max  m
               pltpu.VMEM((TQ, 1), jnp.float32),   # running sum  l
               pltpu.VMEM((TQ, D), jnp.float32)]   # running out  acc

    itm = jnp.dtype(q.dtype).itemsize
    otm = jnp.dtype(out_dtype).itemsize
    cost = pl.CostEstimate(
        flops=4 * B * H * T * T * D,
        transcendentals=B * H * T * T,
        bytes_accessed=int(B * H * T * D * itm           # q (once per q tile)
                           + 2 * B * H * nq * T * D * itm  # k,v re-stream / q tile
                           + B * T * H * D * otm))
    return pl.pallas_call(
        _flash_kernel,
        out_shape=jax.ShapeDtypeStruct((B, T, H * D), out_dtype),
        grid=grid,
        in_specs=[q_spec, k_spec, v_spec],
        out_specs=o_spec,
        scratch_shapes=scratch,
        compiler_params=pltpu.CompilerParams(
            dimension_semantics=("parallel", "parallel", "parallel",
                                 "arbitrary"),
            vmem_limit_bytes=32 * 1024 * 1024),
        cost_estimate=cost,
    )(q, k, v)


# ------------------------------- Wrapper ------------------------------------

def causal_self_attention(x, ve, params, compute_dtype=jnp.bfloat16):
    """Forward pass.  x: (B, T, dim); ve: (B, T, H*D) or None.

    Returns (out, y_pre_proj): out (B, T, dim) in x.dtype,
    y_pre_proj (B, T, H*D) in compute_dtype (pre-c_proj activation).
    """
    B, T, dim = x.shape
    H = params["num_heads"]
    qkv_w = params["qkv_w"]                         # (3, hdim, dim)
    hdim = qkv_w.shape[1]
    result_dtype = x.dtype

    # QKV projection in the compute dtype (bf16 default -> MXU peak), f32
    # accumulation; qkv_w used in its native (out, in) layout (no .T copy).
    xc = x.reshape(B * T, dim).astype(compute_dtype)
    w_qkv = qkv_w.reshape(3 * hdim, dim).astype(compute_dtype)
    qkv = linear_pallas(xc, w_qkv, out_dtype=compute_dtype)    # (B*T, 3*hdim)
    qkv = qkv.reshape(B, T, 3 * hdim)                          # free reshape

    cos = params["rot_cos"][:T].astype(jnp.float32)            # (T, D//2)
    sin = params["rot_sin"][:T].astype(jnp.float32)
    lambdas = params["lambdas"].astype(jnp.float32)
    ve_c = None if ve is None else ve.reshape(B, T, hdim).astype(compute_dtype)

    # One cheap elementwise pass does rms + rope (+0.12 into q) + lambda mix,
    # so the O(T^2) attention loop is pure MXU + softmax.
    q_pre, k_pre, v_pre = preprocess_qkv(qkv, ve_c, cos, sin, lambdas,
                                         num_heads=H, out_dtype=compute_dtype)

    y = flash_attention(q_pre, k_pre, v_pre, num_heads=H,
                        out_dtype=compute_dtype)               # (B, T, hdim)

    w_proj = params["c_proj_w"].astype(compute_dtype)          # (dim, hdim)
    out = linear_pallas(y.reshape(B * T, hdim), w_proj, out_dtype=result_dtype)
    return out.reshape(B, T, dim), y


# ------------------------- Pure-JAX reference -------------------------------

def reference_forward(x, ve, params):
    B, T, dim = x.shape
    qkv_w = params["qkv_w"]
    H = params["num_heads"]
    hdim = qkv_w.shape[1]
    D = hdim // H
    qkv = jnp.einsum("btd,nd->btn", x, qkv_w.reshape(3 * hdim, dim))
    qkv = qkv.reshape(B, T, 3, H, D)
    q, k, v = qkv[:, :, 0], qkv[:, :, 1], qkv[:, :, 2]
    eps = jnp.finfo(jnp.float32).eps
    rms = lambda t: t * jax.lax.rsqrt(jnp.mean(t * t, -1, keepdims=True) + eps)
    q, k = rms(q), rms(k)
    cos = params["rot_cos"][None, :T, None, :]
    sin = params["rot_sin"][None, :T, None, :]

    def rope(t):
        t1, t2 = t[..., :D // 2], t[..., D // 2:]
        return jnp.concatenate([t1 * cos + t2 * sin, -t1 * sin + t2 * cos], -1)

    q, k = rope(q), rope(k)
    lam = params["lambdas"]
    if ve is None:
        v = lam[0] * v
    else:
        v = lam[0] * v + lam[1] * ve.reshape(B, T, H, D)
    s = jnp.einsum("bqhd,bkhd->bhqk", q, k) * 0.12
    p = jax.nn.softmax(s, axis=-1)
    o = jnp.einsum("bhqk,bkhd->bqhd", p, v)
    y = o.reshape(B, T, H * D)
    return y @ params["c_proj_w"].T, y


# --------------------------------- Main --------------------------------------

if __name__ == "__main__":
    B, T = 2, 64
    dim, num_heads, head_dim, max_seq_len = 256, 2, 128, 64
    hdim = num_heads * head_dim

    key = jax.random.PRNGKey(0)
    k_x, k_ve, k_w = jax.random.split(key, 3)

    # qkv_w init: uniform(-bound, bound), bound = sqrt(3) * 0.5 * dim^-0.5
    std = 0.5 * dim ** (-0.5)
    bound = (3.0 ** 0.5) * std
    qkv_w = jax.random.uniform(k_w, (3, hdim, dim), jnp.float32, -bound, bound)
    lambdas = jnp.array([0.5, 0.5], jnp.float32)
    # c_proj weight is explicitly zero-initialized in the reference module.
    c_proj_w = jnp.zeros((dim, hdim), jnp.float32)

    # Rotary tables: head_dim//4 geometric freqs + head_dim//4 zeros.
    ang = (1.0 / 1024) ** jnp.linspace(0.0, 1.0, head_dim // 4, dtype=jnp.float32)
    ang = jnp.concatenate([ang, jnp.zeros(head_dim // 4, jnp.float32)])
    t = jnp.arange(max_seq_len, dtype=jnp.float32)
    theta = jnp.einsum("i,j->ij", t, ang)                    # (max_seq_len, D//2)
    params = dict(qkv_w=qkv_w, lambdas=lambdas, c_proj_w=c_proj_w,
                  rot_cos=jnp.cos(theta), rot_sin=jnp.sin(theta),
                  num_heads=num_heads)

    x = jax.random.normal(k_x, (B, T, dim), jnp.float32)
    ve = jax.random.normal(k_ve, (B, T, hdim), jnp.float32)

    ref_out, ref_y = reference_forward(x, ve, params)
    ref_out_nv, ref_y_nv = reference_forward(x, None, params)

    # 1) f32 compute path: tight check against the pure-JAX reference.
    out, y = causal_self_attention(x, ve, params, compute_dtype=jnp.float32)
    jax.block_until_ready((out, y))
    assert out.shape == (B, T, dim)
    assert jnp.allclose(y, ref_y, atol=1e-4, rtol=1e-4), "attention mismatch (f32)"
    assert jnp.allclose(out, ref_out, atol=1e-4, rtol=1e-4), "projection mismatch (f32)"

    # 2) ve=None path (dedicated kernel variant -- no zero-ve DMA).
    out_nv, y_nv = causal_self_attention(x, None, params, compute_dtype=jnp.float32)
    jax.block_until_ready((out_nv, y_nv))
    assert jnp.allclose(y_nv, ref_y_nv, atol=1e-4, rtol=1e-4), "attention mismatch (ve=None)"

    # 3) bf16 MXU path (default production setting; f32 accumulation).
    #    q/k are quantized to bf16 by the qkv linear before rms/rope (reference
    #    does these in f32) -- intended; dominant contributor to the tolerance.
    out_b, y_b = causal_self_attention(x, ve, params)
    jax.block_until_ready((out_b, y_b))
    assert bool(jnp.all(jnp.isfinite(y_b.astype(jnp.float32))))
    assert jnp.allclose(y_b.astype(jnp.float32), ref_y, atol=8e-2, rtol=8e-2), \
        "attention mismatch (bf16)"

    print("KERNEL_OK")
</pallas_src>

<mosaic_0001>
module attributes {stable_mosaic.version = 11 : i64} {
  func.func @_linear_kernel(%arg0: i32, %arg1: i32, %arg2: i32, %arg3: memref<128x256xf32, #tpu.memory_space<vmem>>, %arg4: memref<384x256xf32, #tpu.memory_space<vmem>>, %arg5: memref<128x384xf32, #tpu.memory_space<vmem>>, %arg6: memref<128x384xf32, #tpu.memory_space<vmem>>) attributes {dimension_semantics = [#tpu.dimension_semantics<parallel>, #tpu.dimension_semantics<parallel>, #tpu.dimension_semantics<arbitrary>], iteration_bounds = array<i64: 1, 2, 1>, scalar_prefetch = 0 : i64, scratch_operands = 1 : i64, tpu.core_type = #tpu.core_type<tc>, window_params = [{transform_indices = @transform_0, window_bounds = array<i64: 128, 256>}, {transform_indices = @transform_1, window_bounds = array<i64: 384, 256>}, {transform_indices = @transform_2, window_bounds = array<i64: 128, 384>}]} {
    %c0_i32 = arith.constant 0 : i32
    %0 = arith.cmpi eq, %arg2, %c0_i32 : i32
    %1 = arith.extui %0 : i1 to i32
    %c0_i32_0 = arith.constant 0 : i32
    %2 = arith.cmpi ne, %1, %c0_i32_0 : i32
    scf.if %2 {
      %cst_10 = arith.constant 0.000000e+00 : f32
      %12 = vector.broadcast %cst_10 : f32 to vector<128x384xf32>
      %c0_11 = arith.constant 0 : index
      %c0_12 = arith.constant 0 : index
      %13 = vector.load %arg6[%c0_11, %c0_12] : memref<128x384xf32, #tpu.memory_space<vmem>>, vector<128x384xf32>
      tpu.vector_store %arg6[%c0_11, %c0_12], %12 {strides = array<i32>} : memref<128x384xf32, #tpu.memory_space<vmem>>, vector<128x384xf32>,
    } else {
    }
    %c0 = arith.constant 0 : index
    %c0_1 = arith.constant 0 : index
    %3 = vector.load %arg6[%c0, %c0_1] : memref<128x384xf32, #tpu.memory_space<vmem>>, vector<128x384xf32>
    %c0_2 = arith.constant 0 : index
    %c0_3 = arith.constant 0 : index
    %4 = vector.load %arg3[%c0_2, %c0_3] : memref<128x256xf32, #tpu.memory_space<vmem>>, vector<128x256xf32>
    %c0_4 = arith.constant 0 : index
    %c0_5 = arith.constant 0 : index
    %5 = vector.load %arg4[%c0_4, %c0_5] : memref<384x256xf32, #tpu.memory_space<vmem>>, vector<384x256xf32>
    %cst = arith.constant dense<0.000000e+00> : vector<128x384xf32>
    %6 = tpu.matmul %4, %5, %cst {dimension_numbers = #tpu.dot_dimension_numbers<[1], [1], [0], [0], [0, 0, 1, 0], [], []>} : vector<128x256xf32>, vector<384x256xf32>, vector<128x384xf32> -> vector<128x384xf32>
    %7 = arith.addf %3, %6 : vector<128x384xf32>
    %c0_6 = arith.constant 0 : index
    %c0_7 = arith.constant 0 : index
    %8 = vector.load %arg6[%c0_6, %c0_7] : memref<128x384xf32, #tpu.memory_space<vmem>>, vector<128x384xf32>
    tpu.vector_store %arg6[%c0_6, %c0_7], %7 {strides = array<i32>} : memref<128x384xf32, #tpu.memory_space<vmem>>, vector<128x384xf32>,
    %c0_i32_8 = arith.constant 0 : i32
    %9 = arith.cmpi eq, %arg2, %c0_i32_8 : i32
    %10 = arith.extui %9 : i1 to i32
    %c0_i32_9 = arith.constant 0 : i32
    %11 = arith.cmpi ne, %10, %c0_i32_9 : i32
    scf.if %11 {
      %c0_10 = arith.constant 0 : index
      %c0_11 = arith.constant 0 : index
      %12 = vector.load %arg6[%c0_10, %c0_11] : memref<128x384xf32, #tpu.memory_space<vmem>>, vector<128x384xf32>
      %c0_12 = arith.constant 0 : index
      %c0_13 = arith.constant 0 : index
      %13 = vector.load %arg5[%c0_12, %c0_13] : memref<128x384xf32, #tpu.memory_space<vmem>>, vector<128x384xf32>
      tpu.vector_store %arg5[%c0_12, %c0_13], %12 {strides = array<i32>} : memref<128x384xf32, #tpu.memory_space<vmem>>, vector<128x384xf32>,
    } else {
    }
    return
  }
  func.func @transform_0(%arg0: i32, %arg1: i32, %arg2: i32) -> (i32, i32) {
    %c0_i32 = arith.constant 0 : i32
    return %arg0, %arg2 : i32, i32
  }
  func.func @transform_1(%arg0: i32, %arg1: i32, %arg2: i32) -> (i32, i32) {
    %c0_i32 = arith.constant 0 : i32
    return %arg1, %arg2 : i32, i32
  }
  func.func @transform_2(%arg0: i32, %arg1: i32, %arg2: i32) -> (i32, i32) {
    %c0_i32 = arith.constant 0 : i32
    return %arg0, %arg1 : i32, i32
  }
}

</mosaic_0001>

<bundles_post_ra>
// kernel: tpu_custom_call.1
= control target key start
LH: loop header
LB: loop body
LE: loop exit
PB: predicated region body
PF: predicated region fallthrough
CT: control target
= control target key end

     0   :  { %7 = vsyncpa [#allocation4], 0  ;;  %s1902_s0 = inlined_call_operand.hbm [shape: f32[128,256], index: 0, kind: input, shape index: {}]   ;;  %s1903_s1 = inlined_call_operand.hbm [shape: f32[768,256], index: 1, kind: input, shape index: {}]   ;;  %s1904_s2 = inlined_call_operand.hbm [shape: f32[128,768], index: 2, kind: output, shape index: {}]  }
   0x1   :  { %8 = vsyncpa [#allocation7], 0 }
   0x2   :  { %10 = vsyncpa [#allocation7 + $0x1], 0 }
   0x3   :  { %11 = vsyncpa [#allocation5], 0 }
   0x4   :  { %13 = vsyncpa [#allocation5 + $0x1], 0  ;;  %s1463_s9 = smov 0   ;;  %s1465_s10 = smov 0  }
   0x5   :  { %s1467_s11 = smov 0   ;;  %s1469_s12 = smov 0  }
   0x6   :  { %s1471_s13 = smov 0   ;;  %s1473_s14 = smov 0  }
   0x7 LB: > { %s1165_s15 = sadd.s32 4294967295, %s1440_s14   ;;  %s1166_s16 = sadd.s32 4294967294, %s1440_s14   ;;  %s1440_s14 = sphi %s1473_s14, %s19_s14   ;;  %s1436_s13 = sphi %s1471_s13, %s1915_s13   ;;  %s1432_s12 = sphi %s1469_s12, %s1914_s12   ;;  %s1428_s11 = sphi %s1467_s11, %s1913_s11   ;;  %s1424_s10 = sphi %s1465_s10, %s1912_s10   ;;  %s1420_s9 = sphi %s1463_s9, %s1911_s9  }
   0x8   : > { %p88_p0 = scmp.ne.s32.totalorder %s1424_s10, %s1420_s9  ;;  %p1497_p1 = scmp.eq.s32.totalorder %s1165_s15, 0 }
   0x9   : > { %p1501_p2 = scmp.eq.s32.totalorder %s1165_s15, 1  ;;  %p120_p3 = scmp.eq.s32.totalorder %s1166_s16, 1 }
   0xa   : > { %p1507_p4 = por %p1497_p1, %p88_p0  ;;  %p1167_p5 = scmp.ge.s32.totalorder %s1440_s14, 1 }
   0xb   : > { %p1512_p6 = por %p120_p3, %p88_p0  ;;  %p127_p7 = scmp.lt.s32.totalorder %s1440_s14, 3 }
   0xc   : > { %s144_s23 = sshll.u32 %s1902_s0, 4  ;;  %s1442_s25 = smov [#allocation3]   ;;  %s145_s23 = int_to_ptr.hbm [resolvable:$true] %s144_s23 }
   0xd   : > { %p1520_p8 = pnand %p1167_p5, %p127_p7  ;;  %s146_s26 = sshll.u32 %s1442_s25, 4  ;;  %s147_s26 = int_to_ptr.vmem [resolvable:$true] %s146_s26 }
   0xe   : > { %p1169_p11 = scmp.ge.s32.totalorder %s1440_s14, 2  ;;  %s1443_s27 = smov 256  }
   0xf   : > { %p1224_p9 = pneg %p1520_p8  ;;  %s1444_s28 = smov 16  }
  0x10   : > { %s34_s29 = sadd.s32 1, %s1436_s13  ;;  %s75_s30 = sadd.s32 1, %s1428_s11 }
  0x11   : > { %p1225_p10 = pnand %p1224_p9, %p1497_p1  ;;  %p36_p12 = scmp.ge.s32.totalorder %s34_s29, 2 }
  0x12   : > { %p82_p13 = scmp.ne.s32.totalorder %s1428_s11, %s1424_s10  ;;  %p83_p0 = scmp.eq.s32.totalorder %s1440_s14, 0 }
  0x13   : > { %1227 = dma.hbm_to_vmem [thread:$0]  (!%p1225_p10), %s145_s23, 4096, %s147_s26, [#allocation4], %s1443_s27, %s1443_s27, %s1444_s28  }
  0x14   : > { %s1917_s29 = smov (%p36_p12, %s34_s29), 0  ;;  %p84_p3 = por %p83_p0, %p82_p13 }
  0x15   : > { %p1541_p5 = por %p1501_p2, %p82_p13  ;;  %s70_s4 = ssub.s32 %s1436_s13, %s1917_s29 }
  0x16   : > { %p1237_p7 = scmp.lt.s32.totalorder %s1440_s14, 2  ;;  %p73_p9 = scmp.eq.s32.totalorder %s70_s4, 0 }
  0x17   : > { %s160_s5 = sand.u32 1, %s1428_s11   ;;  %s1180_s8 = smul.u32 768, %s1436_s13 }
  0x18   : > { %s1213_s6 = smul.u32 768, %s160_s5  ;;  %p1229_p10 = pnand %p1237_p7, %p84_p3 }
  0x19   : > { %s1550_s7 = scalar_select %p73_p9, %s1428_s11, %s75_s30  }
  0x1a   : > { %s164_s15 = scalar_lea.vmem [#allocation6], %s1213_s6  ;;  %s172_s23 = scalar_lea.hbm %s1903_s1, %s1180_s8 }
  0x1b   : > { %s175_s16 = sshll.u32 %s164_s15, 4  ;;  %s173_s18 = sshll.u32 %s172_s23, 4  ;;  %s176_s16 = int_to_ptr.vmem [resolvable:$true] %s175_s16  ;;  %s174_s18 = int_to_ptr.hbm [resolvable:$true] %s173_s18 }
  0x1c   : > { %s161_s25 = scalar_lea.sflag [#allocation7], %s160_s5  ;;  %187 = sbr.rel (%p1520_p8) target bundleno = 426 (0x1aa), region = 28 }
  0x1d   : > { %1231 = dma.hbm_to_vmem [thread:$0]  (!%p1229_p10), %s174_s18, 12288, %s176_s16, %s161_s25, %s1443_s27, %s1443_s27, %s1444_s28  }
  0x21   : > { %1407 = dma.done.wait (%p1497_p1), [#allocation4], 4096  }
  0x22   : > { %1409 = vsyncadd (%p1497_p1), [#allocation4], 4294963200  ;;  %s1566_s26 = sand.u32 1, %s1424_s10  }
  0x23   : > { %s1214_s30 = smul.u32 768, %s1566_s26  ;;  %s195_s4 = scalar_lea.sflag [#allocation7], %s1566_s26 }
  0x25   : > { %s1570_s5 = scalar_lea.vmem [#allocation6], %s1214_s30 }
  0x26   : > { %1411 = dma.done.wait (%p1507_p4), %s195_s4, 12288  }
  0x27   : > { %1413 = vsyncadd (%p1507_p4), %s195_s4, 4294955008  ;;  %v388_v0 = vld [vmem:[%s1570_s5 + $0xf0] sm:$0xff]  ;;  %v389_v1 = vld [vmem:[%s1570_s5 + $0xf8] sm:$0xff]  ;;  %s1215_s17 = smul.u32 384, %s1566_s26  ;;  %s1374_s18 = scalar_lea.hbm %s1904_s2, 768 }
  0x28   : > { %1181 = vmatpush.xpose.msra.mxu2 %v388_v0  ;;  %1197 = vmatpush.xpose.msra.mxu3 %v389_v1  ;;  %v386_v2 = vld [vmem:[%s1570_s5 + $0xe0] sm:$0xff]  ;;  %v387_v3 = vld [vmem:[%s1570_s5 + $0xe8] sm:$0xff]  ;;  %v384_v4 = vld [vmem:[%s1570_s5 + $0xd0] sm:$0xff]  ;;  %s1179_s24 = smul.u32 24, %s1432_s12  ;;  %s1040_s12 = scalar_lea.sflag [#allocation5], %s1566_s26 }
  0x29   : > { %454 = vmatpush.xpose.msra.mxu0 %v388_v0  ;;  %519 = vmatpush.xpose.msra.mxu1 %v389_v1  ;;  %v385_v5 = vld [vmem:[%s1570_s5 + $0xd8] sm:$0xff]  ;;  %v382_v6 = vld [vmem:[%s1570_s5 + $0xc0] sm:$0xff]  ;;  %v383_v7 = vld [vmem:[%s1570_s5 + $0xc8] sm:$0xff]  ;;  %s1783_s19 = scalar_lea.vmem [#allocation8], %s1215_s17 }
  0x2a   : > { %v380_v8 = vld [vmem:[%s1570_s5 + $0xb0] sm:$0xff]  ;;  %v381_v9 = vld [vmem:[%s1570_s5 + $0xb8] sm:$0xff]  ;;  %v378_v10 = vld [vmem:[%s1570_s5 + $0xa0] sm:$0xff]  ;;  %s1054_s6 = scalar_lea.hbm %s1904_s2, %s1179_s24  ;;  %s1055_s8 = sshll.u32 %s1783_s19, 4  ;;  %s1056_s8 = int_to_ptr.vmem [resolvable:$true] %s1055_s8 }
  0x2b   : > { %v379_v11 = vld [vmem:[%s1570_s5 + $0xa8] sm:$0xff]  ;;  %v376_v12 = vld [vmem:[%s1570_s5 + $0x90] sm:$0xff]  ;;  %v377_v13 = vld [vmem:[%s1570_s5 + $0x98] sm:$0xff]  ;;  %s1057_s15 = sshll.u32 %s1054_s6, 4  ;;  %s1058_s15 = int_to_ptr.hbm [resolvable:$true] %s1057_s15 }
  0x2c   : > { %1182 = vmatpush.xpose.msra.mxu2 %v386_v2  ;;  %1198 = vmatpush.xpose.msra.mxu3 %v387_v3  ;;  %v374_v14 = vld [vmem:[%s1570_s5 + $0x80] sm:$0xff]  ;;  %v375_v15 = vld [vmem:[%s1570_s5 + $0x88] sm:$0xff]  ;;  %v372_v16 = vld [vmem:[%s1570_s5 + $0x70] sm:$0xff]  ;;  %s1368_s16 = sshra.s32 %s1058_s15, 4  ;;  %s1369_s16 = int_to_ptr.hbm [resolvable:$true] %s1368_s16 }
  0x2d   : > { %455 = vmatpush.xpose.msra.mxu0 %v386_v2  ;;  %520 = vmatpush.xpose.msra.mxu1 %v387_v3  ;;  %v373_v17 = vld [vmem:[%s1570_s5 + $0x78] sm:$0xff]  ;;  %v370_v18 = vld [vmem:[%s1570_s5 + $0x60] sm:$0xff]  ;;  %v371_v19 = vld [vmem:[%s1570_s5 + $0x68] sm:$0xff]  ;;  %s1370_s21 = scalar_lea.hbm %s1369_s16, 384  ;;  %p1375_p8 = scmp.lt.s32.totalorder %s1369_s16, %s1904_s2 }
  0x2e   : > { %v368_v20 = vld [vmem:[%s1570_s5 + $0x50] sm:$0xff]  ;;  %v369_v21 = vld [vmem:[%s1570_s5 + $0x58] sm:$0xff]  ;;  %v366_v22 = vld [vmem:[%s1570_s5 + $0x40] sm:$0xff]  ;;  %p1371_p1 = scmp.ne.s32.totalorder %s1369_s16, %s1370_s21  ;;  %p1376_p12 = scmp.lt.s32.totalorder %s1374_s18, %s1370_s21 }
  0x2f   : > { %v367_v23 = vld [vmem:[%s1570_s5 + $0x48] sm:$0xff]  ;;  %v364_v24 = vld [vmem:[%s1570_s5 + $0x30] sm:$0xff]  ;;  %v365_v25 = vld [vmem:[%s1570_s5 + $0x38] sm:$0xff] }
  0x30   : > { %1183 = vmatpush.xpose.msra.mxu2 %v384_v4  ;;  %1199 = vmatpush.xpose.msra.mxu3 %v385_v5  ;;  %v362_v26 = vld [vmem:[%s1570_s5 + $0x20] sm:$0xff]  ;;  %v363_v27 = vld [vmem:[%s1570_s5 + $0x28] sm:$0xff]  ;;  %v360_v28 = vld [vmem:[%s1570_s5 + $0x10] sm:$0xff]  ;;  %p1372_p2 = pnand %p1371_p1, %p1541_p5  ;;  %p1377_p13 = por %p1376_p12, %p1375_p8 }
  0x31   : > { %456 = vmatpush.xpose.msra.mxu0 %v384_v4  ;;  %521 = vmatpush.xpose.msra.mxu1 %v385_v5  ;;  %v361_v29 = vld [vmem:[%s1570_s5 + $0x18] sm:$0xff]  ;;  %v358_v30 = vld [vmem:[%s1570_s5] sm:$0xff]  ;;  %v359_v31 = vld [vmem:[%s1570_s5 + $0x8] sm:$0xff] }
  0x32   : > { %v420_v32 = vld [vmem:[%s1570_s5 + $0x1f0] sm:$0xff]  ;;  %v421_v33 = vld [vmem:[%s1570_s5 + $0x1f8] sm:$0xff]  ;;  %v1610_v34 = vld [vmem:[#allocation3 + $0x80] sm:$0xff]  ;;  %p1373_p4 = pneg %p1372_p2 }
  0x33   : > { %v1612_v35 = vld [vmem:[#allocation3 + $0x88] sm:$0xff]  ;;  %v452_v36 = vld [vmem:[%s1570_s5 + $0x2f0] sm:$0xff]  ;;  %v453_v37 = vld [vmem:[%s1570_s5 + $0x2f8] sm:$0xff] }
  0x34   : > { %1184 = vmatpush.xpose.msra.mxu2 %v382_v6  ;;  %1200 = vmatpush.xpose.msra.mxu3 %v383_v7  ;;  %v418_v38 = vld [vmem:[%s1570_s5 + $0x1e0] sm:$0xff]  ;;  %v419_v39 = vld [vmem:[%s1570_s5 + $0x1e8] sm:$0xff]  ;;  %v416_v44 = vld [vmem:[%s1570_s5 + $0x1d0] sm:$0xff]  ;;  %p1378_p0 = pnand %p1377_p13, %p1373_p4 }
  0x35   : > { %457 = vmatpush.xpose.msra.mxu0 %v382_v6  ;;  %522 = vmatpush.xpose.msra.mxu1 %v383_v7  ;;  %v1620_v40 = vld [vmem:[#allocation3] sm:$0xff]  ;;  %v1622_v41 = vld [vmem:[#allocation3 + $0x8] sm:$0xff]  ;;  %v417_v45 = vld [vmem:[%s1570_s5 + $0x1d8] sm:$0xff] }
  0x36   : > { %v450_v42 = vld [vmem:[%s1570_s5 + $0x2e0] sm:$0xff]  ;;  %v451_v43 = vld [vmem:[%s1570_s5 + $0x2e8] sm:$0xff]  ;;  %v1630_v46 = vld [vmem:[#allocation3 + $0x90] sm:$0xff] }
  0x37   : > { %v1632_v47 = vld [vmem:[#allocation3 + $0x98] sm:$0xff]  ;;  %v448_v48 = vld [vmem:[%s1570_s5 + $0x2d0] sm:$0xff]  ;;  %v414_v50 = vld [vmem:[%s1570_s5 + $0x1c0] sm:$0xff] }
  0x38   : > { %1185 = vmatpush.xpose.msra.mxu2 %v380_v8  ;;  %1201 = vmatpush.xpose.msra.mxu3 %v381_v9  ;;  %v449_v49 = vld [vmem:[%s1570_s5 + $0x2d8] sm:$0xff]  ;;  %v415_v51 = vld [vmem:[%s1570_s5 + $0x1c8] sm:$0xff]  ;;  %v1640_v52 = vld [vmem:[#allocation3 + $0x10] sm:$0xff] }
  0x39   : > { %458 = vmatpush.xpose.msra.mxu0 %v380_v8  ;;  %523 = vmatpush.xpose.msra.mxu1 %v381_v9  ;;  %v1642_v53 = vld [vmem:[#allocation3 + $0x18] sm:$0xff]  ;;  %v446_v54 = vld [vmem:[%s1570_s5 + $0x2c0] sm:$0xff]  ;;  %v447_v55 = vld [vmem:[%s1570_s5 + $0x2c8] sm:$0xff] }
  0x3a   : > { %v412_v56 = vld [vmem:[%s1570_s5 + $0x1b0] sm:$0xff]  ;;  %v413_v57 = vld [vmem:[%s1570_s5 + $0x1b8] sm:$0xff]  ;;  %v1650_v58 = vld [vmem:[#allocation3 + $0xa0] sm:$0xff] }
  0x3b   : > { %v1652_v59 = vld [vmem:[#allocation3 + $0xa8] sm:$0xff]  ;;  %v444_v60 = vld [vmem:[%s1570_s5 + $0x2b0] sm:$0xff]  ;;  %v445_v61 = vld [vmem:[%s1570_s5 + $0x2b8] sm:$0xff] }
  0x3c   : > { %1186 = vmatpush.xpose.msra.mxu2 %v378_v10  ;;  %1202 = vmatpush.xpose.msra.mxu3 %v379_v11  ;;  %v410_v62 = vld [vmem:[%s1570_s5 + $0x1a0] sm:$0xff]  ;;  %v411_v63 = vld [vmem:[%s1570_s5 + $0x1a8] sm:$0xff]  ;;  %v408_v4 = vld [vmem:[%s1570_s5 + $0x190] sm:$0xff] }
  0x3d   : > { %459 = vmatpush.xpose.msra.mxu0 %v378_v10  ;;  %524 = vmatpush.xpose.msra.mxu1 %v379_v11  ;;  %v1660_v0 = vld [vmem:[#allocation3 + $0x20] sm:$0xff]  ;;  %v1662_v1 = vld [vmem:[#allocation3 + $0x28] sm:$0xff]  ;;  %v409_v5 = vld [vmem:[%s1570_s5 + $0x198] sm:$0xff] }
  0x3e   : > { %v442_v2 = vld [vmem:[%s1570_s5 + $0x2a0] sm:$0xff]  ;;  %v443_v3 = vld [vmem:[%s1570_s5 + $0x2a8] sm:$0xff]  ;;  %v1670_v6 = vld [vmem:[#allocation3 + $0xb0] sm:$0xff] }
  0x3f   : > { %v1672_v7 = vld [vmem:[#allocation3 + $0xb8] sm:$0xff]  ;;  %v440_v8 = vld [vmem:[%s1570_s5 + $0x290] sm:$0xff]  ;;  %v406_v10 = vld [vmem:[%s1570_s5 + $0x180] sm:$0xff] }
  0x40   : > { %1187 = vmatpush.xpose.msra.mxu2 %v376_v12  ;;  %1203 = vmatpush.xpose.msra.mxu3 %v377_v13  ;;  %v441_v9 = vld [vmem:[%s1570_s5 + $0x298] sm:$0xff]  ;;  %v407_v11 = vld [vmem:[%s1570_s5 + $0x188] sm:$0xff] }
  0x41   : > { %460 = vmatpush.xpose.msra.mxu0 %v376_v12  ;;  %525 = vmatpush.xpose.msra.mxu1 %v377_v13  ;;  %v1680_v12 = vld [vmem:[#allocation3 + $0x30] sm:$0xff]  ;;  %v1682_v13 = vld [vmem:[#allocation3 + $0x38] sm:$0xff] }
  0x44   : > { %1188 = vmatpush.xpose.msra.mxu2 %v374_v14  ;;  %1204 = vmatpush.xpose.msra.mxu3 %v375_v15 }
  0x45   : > { %461 = vmatpush.xpose.msra.mxu0 %v374_v14  ;;  %526 = vmatpush.xpose.msra.mxu1 %v375_v15  ;;  %v438_v14 = vld [vmem:[%s1570_s5 + $0x280] sm:$0xff]  ;;  %v439_v15 = vld [vmem:[%s1570_s5 + $0x288] sm:$0xff] }
  0x48   : > { %1189 = vmatpush.xpose.msra.mxu2 %v372_v16  ;;  %1205 = vmatpush.xpose.msra.mxu3 %v373_v17 }
  0x49   : > { %462 = vmatpush.xpose.msra.mxu0 %v372_v16  ;;  %527 = vmatpush.xpose.msra.mxu1 %v373_v17  ;;  %v404_v16 = vld [vmem:[%s1570_s5 + $0x170] sm:$0xff]  ;;  %v405_v17 = vld [vmem:[%s1570_s5 + $0x178] sm:$0xff] }
  0x4c   : > { %1190 = vmatpush.xpose.msra.mxu2 %v370_v18  ;;  %1206 = vmatpush.xpose.msra.mxu3 %v371_v19 }
  0x4d   : > { %463 = vmatpush.xpose.msra.mxu0 %v370_v18  ;;  %528 = vmatpush.xpose.msra.mxu1 %v371_v19  ;;  %v1690_v18 = vld [vmem:[#allocation3 + $0xc0] sm:$0xff]  ;;  %v1692_v19 = vld [vmem:[#allocation3 + $0xc8] sm:$0xff] }
  0x50   : > { %1191 = vmatpush.xpose.msra.mxu2 %v368_v20  ;;  %1207 = vmatpush.xpose.msra.mxu3 %v369_v21 }
  0x51   : > { %464 = vmatpush.xpose.msra.mxu0 %v368_v20  ;;  %529 = vmatpush.xpose.msra.mxu1 %v369_v21  ;;  %v436_v20 = vld [vmem:[%s1570_s5 + $0x270] sm:$0xff]  ;;  %v437_v21 = vld [vmem:[%s1570_s5 + $0x278] sm:$0xff] }
  0x54   : > { %1192 = vmatpush.xpose.msra.mxu2 %v366_v22  ;;  %1208 = vmatpush.xpose.msra.mxu3 %v367_v23 }
  0x55   : > { %465 = vmatpush.xpose.msra.mxu0 %v366_v22  ;;  %530 = vmatpush.xpose.msra.mxu1 %v367_v23  ;;  %v402_v22 = vld [vmem:[%s1570_s5 + $0x160] sm:$0xff]  ;;  %v403_v23 = vld [vmem:[%s1570_s5 + $0x168] sm:$0xff] }
  0x58   : > { %1193 = vmatpush.xpose.msra.mxu2 %v364_v24  ;;  %1209 = vmatpush.xpose.msra.mxu3 %v365_v25 }
  0x59   : > { %466 = vmatpush.xpose.msra.mxu0 %v364_v24  ;;  %531 = vmatpush.xpose.msra.mxu1 %v365_v25  ;;  %v1700_v24 = vld [vmem:[#allocation3 + $0x40] sm:$0xff]  ;;  %v1702_v25 = vld [vmem:[#allocation3 + $0x48] sm:$0xff] }
  0x5c   : > { %1194 = vmatpush.xpose.msra.mxu2 %v362_v26  ;;  %1210 = vmatpush.xpose.msra.mxu3 %v363_v27 }
  0x5d   : > { %467 = vmatpush.xpose.msra.mxu0 %v362_v26  ;;  %532 = vmatpush.xpose.msra.mxu1 %v363_v27  ;;  %v434_v26 = vld [vmem:[%s1570_s5 + $0x260] sm:$0xff]  ;;  %v435_v27 = vld [vmem:[%s1570_s5 + $0x268] sm:$0xff] }
  0x60   : > { %1195 = vmatpush.xpose.msra.mxu2 %v360_v28  ;;  %1211 = vmatpush.xpose.msra.mxu3 %v361_v29 }
  0x61   : > { %468 = vmatpush.xpose.msra.mxu0 %v360_v28  ;;  %533 = vmatpush.xpose.msra.mxu1 %v361_v29  ;;  %v400_v28 = vld [vmem:[%s1570_s5 + $0x150] sm:$0xff]  ;;  %v401_v29 = vld [vmem:[%s1570_s5 + $0x158] sm:$0xff] }
  0x64   : > { %1196 = vmatpush.xpose.msra.mxu2 %v358_v30  ;;  %1212 = vmatpush.xpose.msra.mxu3 %v359_v31 }
  0x65   : > { %469 = vmatpush.xpose.msra.mxu0 %v358_v30  ;;  %534 = vmatpush.xpose.msra.mxu1 %v359_v31  ;;  %v1710_v30 = vld [vmem:[#allocation3 + $0xd0] sm:$0xff]  ;;  %v1712_v31 = vld [vmem:[#allocation3 + $0xd8] sm:$0xff] }
  0x67   : > { %494 = vmatmul.f32.vlgmr.msra.gmra.mxu2 %v1610_v34  ;;  %559 = vmatmul.f32.vlgmr.msra.gmra.mxu3 %v1612_v35 }
  0x68   : > { %584 = vmatpush.xpose.msrb.mxu2 %v420_v32  ;;  %649 = vmatpush.xpose.msrb.mxu3 %v421_v33  ;;  %v432_v32 = vld [vmem:[%s1570_s5 + $0x250] sm:$0xff]  ;;  %v433_v33 = vld [vmem:[%s1570_s5 + $0x258] sm:$0xff] }
  0x69   : > { %714 = vmatpush.xpose.msrb.mxu0 %v452_v36  ;;  %779 = vmatpush.xpose.msrb.mxu1 %v453_v37  ;;  %v398_v36 = vld [vmem:[%s1570_s5 + $0x140] sm:$0xff]  ;;  %v399_v37 = vld [vmem:[%s1570_s5 + $0x148] sm:$0xff] }
  0x6a   : > { %470 = vmatmul.f32.vlgmr.msra.gmra.mxu0 %v1620_v40  ;;  %535 = vmatmul.f32.vlgmr.msra.gmra.mxu1 %v1622_v41 }
  0x6c   : > { %585 = vmatpush.xpose.msrb.mxu2 %v418_v38  ;;  %650 = vmatpush.xpose.msrb.mxu3 %v419_v39  ;;  %v1720_v38 = vld [vmem:[#allocation3 + $0x50] sm:$0xff]  ;;  %v1722_v39 = vld [vmem:[#allocation3 + $0x58] sm:$0xff] }
  0x6d   : > { %715 = vmatpush.xpose.msrb.mxu0 %v450_v42  ;;  %780 = vmatpush.xpose.msrb.mxu1 %v451_v43  ;;  %v430_v42 = vld [vmem:[%s1570_s5 + $0x240] sm:$0xff]  ;;  %v431_v43 = vld [vmem:[%s1570_s5 + $0x248] sm:$0xff] }
  0x6f   : > { %497 = vmatmul.f32.gmra.mxu2 %v1630_v46  ;;  %562 = vmatmul.f32.gmra.mxu3 %v1632_v47 }
  0x70   : > { %586 = vmatpush.xpose.msrb.mxu2 %v416_v44  ;;  %651 = vmatpush.xpose.msrb.mxu3 %v417_v45  ;;  %v396_v44 = vld [vmem:[%s1570_s5 + $0x130] sm:$0xff]  ;;  %v397_v45 = vld [vmem:[%s1570_s5 + $0x138] sm:$0xff] }
  0x71   : > { %716 = vmatpush.xpose.msrb.mxu0 %v448_v48  ;;  %781 = vmatpush.xpose.msrb.mxu1 %v449_v49  ;;  %v1730_v48 = vld [vmem:[#allocation3 + $0xe0] sm:$0xff]  ;;  %v1732_v49 = vld [vmem:[#allocation3 + $0xe8] sm:$0xff] }
  0x72   : > { %473 = vmatmul.f32.gmra.mxu0 %v1640_v52  ;;  %538 = vmatmul.f32.gmra.mxu1 %v1642_v53 }
  0x74   : > { %587 = vmatpush.xpose.msrb.mxu2 %v414_v50  ;;  %652 = vmatpush.xpose.msrb.mxu3 %v415_v51  ;;  %v428_v50 = vld [vmem:[%s1570_s5 + $0x230] sm:$0xff]  ;;  %v429_v51 = vld [vmem:[%s1570_s5 + $0x238] sm:$0xff] }
  0x75   : > { %717 = vmatpush.xpose.msrb.mxu0 %v446_v54  ;;  %782 = vmatpush.xpose.msrb.mxu1 %v447_v55  ;;  %v394_v54 = vld [vmem:[%s1570_s5 + $0x120] sm:$0xff]  ;;  %v395_v55 = vld [vmem:[%s1570_s5 + $0x128] sm:$0xff] }
  0x77   : > { %500 = vmatmul.f32.gmra.mxu2 %v1650_v58  ;;  %565 = vmatmul.f32.gmra.mxu3 %v1652_v59 }
  0x78   : > { %588 = vmatpush.xpose.msrb.mxu2 %v412_v56  ;;  %653 = vmatpush.xpose.msrb.mxu3 %v413_v57  ;;  %v338_v56 = vld [vmem:[#allocation3 + $0x60] sm:$0xff]  ;;  %v339_v57 = vld [vmem:[#allocation3 + $0x68] sm:$0xff] }
  0x79   : > { %718 = vmatpush.xpose.msrb.mxu0 %v444_v60  ;;  %783 = vmatpush.xpose.msrb.mxu1 %v445_v61  ;;  %v426_v60 = vld [vmem:[%s1570_s5 + $0x220] sm:$0xff]  ;;  %v427_v61 = vld [vmem:[%s1570_s5 + $0x228] sm:$0xff] }
  0x7a   : > { %476 = vmatmul.f32.gmra.mxu0 %v1660_v0  ;;  %541 = vmatmul.f32.gmra.mxu1 %v1662_v1 }
  0x7c   : > { %589 = vmatpush.xpose.msrb.mxu2 %v410_v62  ;;  %654 = vmatpush.xpose.msrb.mxu3 %v411_v63  ;;  %v392_v62 = vld [vmem:[%s1570_s5 + $0x110] sm:$0xff]  ;;  %v393_v63 = vld [vmem:[%s1570_s5 + $0x118] sm:$0xff] }
  0x7d   : > { %719 = vmatpush.xpose.msrb.mxu0 %v442_v2  ;;  %784 = vmatpush.xpose.msrb.mxu1 %v443_v3  ;;  %v1744_v2 = vld [vmem:[#allocation3 + $0xf0] sm:$0xff]  ;;  %v1746_v3 = vld [vmem:[#allocation3 + $0xf8] sm:$0xff] }
  0x7f   : > { %503 = vmatmul.f32.gmra.mxu2 %v1670_v6  ;;  %568 = vmatmul.f32.gmra.mxu3 %v1672_v7 }
  0x80   : > { %590 = vmatpush.xpose.msrb.mxu2 %v408_v4  ;;  %655 = vmatpush.xpose.msrb.mxu3 %v409_v5  ;;  %v424_v4 = vld [vmem:[%s1570_s5 + $0x210] sm:$0xff]  ;;  %v425_v5 = vld [vmem:[%s1570_s5 + $0x218] sm:$0xff] }
  0x81   : > { %720 = vmatpush.xpose.msrb.mxu0 %v440_v8  ;;  %785 = vmatpush.xpose.msrb.mxu1 %v441_v9  ;;  %v390_v8 = vld [vmem:[%s1570_s5 + $0x100] sm:$0xff]  ;;  %v391_v9 = vld [vmem:[%s1570_s5 + $0x108] sm:$0xff] }
  0x82   : > { %479 = vmatmul.f32.gmra.mxu0 %v1680_v12  ;;  %544 = vmatmul.f32.gmra.mxu1 %v1682_v13 }
  0x84   : > { %591 = vmatpush.xpose.msrb.mxu2 %v406_v10  ;;  %656 = vmatpush.xpose.msrb.mxu3 %v407_v11  ;;  %v340_v10 = vld [vmem:[#allocation3 + $0x70] sm:$0xff]  ;;  %v341_v11 = vld [vmem:[#allocation3 + $0x78] sm:$0xff] }
  0x85   : > { %721 = vmatpush.xpose.msrb.mxu0 %v438_v14  ;;  %786 = vmatpush.xpose.msrb.mxu1 %v439_v15  ;;  %v422_v14 = vld [vmem:[%s1570_s5 + $0x200] sm:$0xff]  ;;  %v423_v15 = vld [vmem:[%s1570_s5 + $0x208] sm:$0xff] }
  0x87   : > { %506 = vmatmul.f32.gmra.mxu2 %v1690_v18  ;;  %571 = vmatmul.f32.gmra.mxu3 %v1692_v19 }
  0x88   : > { %592 = vmatpush.xpose.msrb.mxu2 %v404_v16  ;;  %657 = vmatpush.xpose.msrb.mxu3 %v405_v17 }
  0x89   : > { %722 = vmatpush.xpose.msrb.mxu0 %v436_v20  ;;  %787 = vmatpush.xpose.msrb.mxu1 %v437_v21 }
  0x8a   : > { %482 = vmatmul.f32.gmra.mxu0 %v1700_v24  ;;  %547 = vmatmul.f32.gmra.mxu1 %v1702_v25 }
  0x8c   : > { %593 = vmatpush.xpose.msrb.mxu2 %v402_v22  ;;  %658 = vmatpush.xpose.msrb.mxu3 %v403_v23 }
  0x8d   : > { %723 = vmatpush.xpose.msrb.mxu0 %v434_v26  ;;  %788 = vmatpush.xpose.msrb.mxu1 %v435_v27 }
  0x8f   : > { %509 = vmatmul.f32.gmra.mxu2 %v1710_v30  ;;  %574 = vmatmul.f32.gmra.mxu3 %v1712_v31 }
  0x90   : > { %594 = vmatpush.xpose.msrb.mxu2 %v400_v28  ;;  %659 = vmatpush.xpose.msrb.mxu3 %v401_v29 }
  0x91   : > { %724 = vmatpush.xpose.msrb.mxu0 %v432_v32  ;;  %789 = vmatpush.xpose.msrb.mxu1 %v433_v33 }
  0x92   : > { %485 = vmatmul.f32.gmra.mxu0 %v1720_v38  ;;  %550 = vmatmul.f32.gmra.mxu1 %v1722_v39 }
  0x94   : > { %595 = vmatpush.xpose.msrb.mxu2 %v398_v36  ;;  %660 = vmatpush.xpose.msrb.mxu3 %v399_v37 }
  0x95   : > { %725 = vmatpush.xpose.msrb.mxu0 %v430_v42  ;;  %790 = vmatpush.xpose.msrb.mxu1 %v431_v43 }
  0x97   : > { %512 = vmatmul.f32.gmra.mxu2 %v1730_v48  ;;  %577 = vmatmul.f32.gmra.mxu3 %v1732_v49 }
  0x98   : > { %596 = vmatpush.xpose.msrb.mxu2 %v396_v44  ;;  %661 = vmatpush.xpose.msrb.mxu3 %v397_v45 }
  0x99   : > { %726 = vmatpush.xpose.msrb.mxu0 %v428_v50  ;;  %791 = vmatpush.xpose.msrb.mxu1 %v429_v51 }
  0x9a   : > { %488 = vmatmul.f32.gmra.mxu0 %v338_v56  ;;  %553 = vmatmul.f32.gmra.mxu1 %v339_v57 }
  0x9c   : > { %597 = vmatpush.xpose.msrb.mxu2 %v394_v54  ;;  %662 = vmatpush.xpose.msrb.mxu3 %v395_v55 }
  0x9d   : > { %727 = vmatpush.xpose.msrb.mxu0 %v426_v60  ;;  %792 = vmatpush.xpose.msrb.mxu1 %v427_v61 }
  0x9f   : > { %515 = vmatmul.f32.gmra.mxu2 %v1744_v2  ;;  %580 = vmatmul.f32.gmra.mxu3 %v1746_v3 }
  0xa0   : > { %598 = vmatpush.xpose.msrb.mxu2 %v392_v62  ;;  %663 = vmatpush.xpose.msrb.mxu3 %v393_v63 }
  0xa1   : > { %728 = vmatpush.xpose.msrb.mxu0 %v424_v4  ;;  %793 = vmatpush.xpose.msrb.mxu1 %v425_v5 }
  0xa2   : > { %491 = vmatmul.f32.gmra.mxu0 %v340_v10  ;;  %556 = vmatmul.f32.gmra.mxu1 %v341_v11 }
  0xa4   : > { %599 = vmatpush.xpose.msrb.mxu2 %v390_v8  ;;  %664 = vmatpush.xpose.msrb.mxu3 %v391_v9 }
  0xa5   : > { %729 = vmatpush.xpose.msrb.mxu0 %v422_v14  ;;  %794 = vmatpush.xpose.msrb.mxu1 %v423_v15 }
  0xa7   : > { %600 = vmatmul.f32.vlgmr.msrb.gmra.mxu2 %v1620_v40  ;;  %665 = vmatmul.f32.vlgmr.msrb.gmra.mxu3 %v1622_v41 }
  0xaa   : > { %730 = vmatmul.f32.vlgmr.msrb.gmra.mxu0 %v1620_v40  ;;  %795 = vmatmul.f32.vlgmr.msrb.gmra.mxu1 %v1622_v41 }
  0xaf   : > { %603 = vmatmul.f32.gmra.mxu2 %v1640_v52  ;;  %668 = vmatmul.f32.gmra.mxu3 %v1642_v53 }
  0xb2   : > { %733 = vmatmul.f32.gmra.mxu0 %v1640_v52  ;;  %798 = vmatmul.f32.gmra.mxu1 %v1642_v53 }
  0xb7   : > { %606 = vmatmul.f32.gmra.mxu2 %v1660_v0  ;;  %671 = vmatmul.f32.gmra.mxu3 %v1662_v1 }
  0xba   : > { %736 = vmatmul.f32.gmra.mxu0 %v1660_v0  ;;  %801 = vmatmul.f32.gmra.mxu1 %v1662_v1 }
  0xbf   : > { %609 = vmatmul.f32.gmra.mxu2 %v1680_v12  ;;  %674 = vmatmul.f32.gmra.mxu3 %v1682_v13 }
  0xc2   : > { %739 = vmatmul.f32.gmra.mxu0 %v1680_v12  ;;  %804 = vmatmul.f32.gmra.mxu1 %v1682_v13 }
  0xc7   : > { %612 = vmatmul.f32.gmra.mxu2 %v1700_v24  ;;  %677 = vmatmul.f32.gmra.mxu3 %v1702_v25 }
  0xca   : > { %742 = vmatmul.f32.gmra.mxu0 %v1700_v24  ;;  %807 = vmatmul.f32.gmra.mxu1 %v1702_v25 }
  0xcf   : > { %615 = vmatmul.f32.gmra.mxu2 %v1720_v38  ;;  %680 = vmatmul.f32.gmra.mxu3 %v1722_v39 }
  0xd2   : > { %745 = vmatmul.f32.gmra.mxu0 %v1720_v38  ;;  %810 = vmatmul.f32.gmra.mxu1 %v1722_v39 }
  0xd7   : > { %618 = vmatmul.f32.gmra.mxu2 %v338_v56  ;;  %683 = vmatmul.f32.gmra.mxu3 %v339_v57 }
  0xda   : > { %748 = vmatmul.f32.gmra.mxu0 %v338_v56  ;;  %813 = vmatmul.f32.gmra.mxu1 %v339_v57 }
  0xdf   : > { %621 = vmatmul.f32.gmra.mxu2 %v340_v10  ;;  %686 = vmatmul.f32.gmra.mxu3 %v341_v11 }
  0xe2   : > { %751 = vmatmul.f32.gmra.mxu0 %v340_v10  ;;  %816 = vmatmul.f32.gmra.mxu1 %v341_v11 }
  0xe7   : > { %624 = vmatmul.f32.gmra.mxu2 %v1610_v34  ;;  %689 = vmatmul.f32.gmra.mxu3 %v1612_v35  ;;  %v471_v40 = vpop.f32.mrf.mxu0  ;;  %v536_v41 = vpop.f32.mrf.mxu1 }
  0xe8   : > { %v537_v52 = vadd.f32 %v536_v41, %v471_v40 }
  0xea   : > { %v495_v53 = vpop.f32.mrf.mxu2  ;;  %991 = vst [vmem:[%s1783_s19] sm:$0xff] %v537_v52  ;;  %v560_v0 = vpop.f32.mrf.mxu3  ;;  %754 = vmatmul.f32.gmra.mxu0 %v1610_v34  ;;  %819 = vmatmul.f32.gmra.mxu1 %v1612_v35 }
  0xeb   : > { %v561_v1 = vadd.f32 %v560_v0, %v495_v53 }
  0xed   : > { %1015 = vst [vmem:[%s1783_s19 + $0xc0] sm:$0xff] %v561_v1 }
  0xef   : > { %627 = vmatmul.f32.gmra.mxu2 %v1630_v46  ;;  %692 = vmatmul.f32.gmra.mxu3 %v1632_v47  ;;  %v474_v12 = vpop.f32.mrf.mxu0  ;;  %v539_v13 = vpop.f32.mrf.mxu1 }
  0xf0   : > { %v540_v16 = vadd.f32 %v539_v13, %v474_v12 }
  0xf2   : > { %v498_v17 = vpop.f32.mrf.mxu2  ;;  %994 = vst [vmem:[%s1783_s19 + $0x18] sm:$0xff] %v540_v16  ;;  %v563_v20 = vpop.f32.mrf.mxu3  ;;  %757 = vmatmul.f32.gmra.mxu0 %v1630_v46  ;;  %822 = vmatmul.f32.gmra.mxu1 %v1632_v47 }
  0xf3   : > { %v564_v34 = vadd.f32 %v563_v20, %v498_v17 }
  0xf5   : > { %1018 = vst [vmem:[%s1783_s19 + $0xd8] sm:$0xff] %v564_v34 }
  0xf7   : > { %630 = vmatmul.f32.gmra.mxu2 %v1650_v58  ;;  %695 = vmatmul.f32.gmra.mxu3 %v1652_v59  ;;  %v477_v35 = vpop.f32.mrf.mxu0  ;;  %v542_v21 = vpop.f32.mrf.mxu1 }
  0xf8   : > { %v543_v22 = vadd.f32 %v542_v21, %v477_v35 }
  0xfa   : > { %v501_v23 = vpop.f32.mrf.mxu2  ;;  %997 = vst [vmem:[%s1783_s19 + $0x30] sm:$0xff] %v543_v22  ;;  %v566_v24 = vpop.f32.mrf.mxu3  ;;  %760 = vmatmul.f32.gmra.mxu0 %v1650_v58  ;;  %825 = vmatmul.f32.gmra.mxu1 %v1652_v59 }
  0xfb   : > { %v567_v46 = vadd.f32 %v566_v24, %v501_v23 }
  0xfd   : > { %1021 = vst [vmem:[%s1783_s19 + $0xf0] sm:$0xff] %v567_v46 }
  0xff   : > { %633 = vmatmul.f32.gmra.mxu2 %v1670_v6  ;;  %698 = vmatmul.f32.gmra.mxu3 %v1672_v7  ;;  %v480_v47 = vpop.f32.mrf.mxu0  ;;  %v545_v25 = vpop.f32.mrf.mxu1 }
 0x100   : > { %v546_v26 = vadd.f32 %v545_v25, %v480_v47 }
 0x102   : > { %v504_v27 = vpop.f32.mrf.mxu2  ;;  %1000 = vst [vmem:[%s1783_s19 + $0x48] sm:$0xff] %v546_v26  ;;  %v569_v28 = vpop.f32.mrf.mxu3  ;;  %763 = vmatmul.f32.gmra.mxu0 %v1670_v6  ;;  %828 = vmatmul.f32.gmra.mxu1 %v1672_v7 }
 0x103   : > { %v570_v58 = vadd.f32 %v569_v28, %v504_v27 }
 0x105   : > { %1024 = vst [vmem:[%s1783_s19 + $0x108] sm:$0xff] %v570_v58 }
 0x107   : > { %636 = vmatmul.f32.gmra.mxu2 %v1690_v18  ;;  %701 = vmatmul.f32.gmra.mxu3 %v1692_v19  ;;  %v483_v59 = vpop.f32.mrf.mxu0  ;;  %v548_v29 = vpop.f32.mrf.mxu1 }
 0x108   : > { %v549_v32 = vadd.f32 %v548_v29, %v483_v59 }
 0x10a   : > { %v507_v33 = vpop.f32.mrf.mxu2  ;;  %1003 = vst [vmem:[%s1783_s19 + $0x60] sm:$0xff] %v549_v32  ;;  %v572_v36 = vpop.f32.mrf.mxu3  ;;  %766 = vmatmul.f32.gmra.mxu0 %v1690_v18  ;;  %831 = vmatmul.f32.gmra.mxu1 %v1692_v19 }
 0x10b   : > { %v573_v6 = vadd.f32 %v572_v36, %v507_v33 }
 0x10d   : > { %1027 = vst [vmem:[%s1783_s19 + $0x120] sm:$0xff] %v573_v6 }
 0x10f   : > { %639 = vmatmul.f32.gmra.mxu2 %v1710_v30  ;;  %704 = vmatmul.f32.gmra.mxu3 %v1712_v31  ;;  %v486_v7 = vpop.f32.mrf.mxu0  ;;  %v551_v37 = vpop.f32.mrf.mxu1 }
 0x110   : > { %v552_v38 = vadd.f32 %v551_v37, %v486_v7 }
 0x112   : > { %v510_v39 = vpop.f32.mrf.mxu2  ;;  %1006 = vst [vmem:[%s1783_s19 + $0x78] sm:$0xff] %v552_v38  ;;  %v575_v42 = vpop.f32.mrf.mxu3  ;;  %769 = vmatmul.f32.gmra.mxu0 %v1710_v30  ;;  %834 = vmatmul.f32.gmra.mxu1 %v1712_v31 }
 0x113   : > { %v576_v18 = vadd.f32 %v575_v42, %v510_v39 }
 0x115   : > { %1030 = vst [vmem:[%s1783_s19 + $0x138] sm:$0xff] %v576_v18 }
 0x117   : > { %642 = vmatmul.f32.gmra.mxu2 %v1730_v48  ;;  %707 = vmatmul.f32.gmra.mxu3 %v1732_v49  ;;  %v489_v19 = vpop.f32.mrf.mxu0  ;;  %v554_v43 = vpop.f32.mrf.mxu1 }
 0x118   : > { %v555_v44 = vadd.f32 %v554_v43, %v489_v19 }
 0x11a   : > { %v513_v45 = vpop.f32.mrf.mxu2  ;;  %1009 = vst [vmem:[%s1783_s19 + $0x90] sm:$0xff] %v555_v44  ;;  %v578_v50 = vpop.f32.mrf.mxu3  ;;  %772 = vmatmul.f32.gmra.mxu0 %v1730_v48  ;;  %837 = vmatmul.f32.gmra.mxu1 %v1732_v49 }
 0x11b   : > { %v579_v30 = vadd.f32 %v578_v50, %v513_v45 }
 0x11d   : > { %1033 = vst [vmem:[%s1783_s19 + $0x150] sm:$0xff] %v579_v30 }
 0x11f   : > { %645 = vmatmul.f32.gmra.mxu2 %v1744_v2  ;;  %710 = vmatmul.f32.gmra.mxu3 %v1746_v3  ;;  %v492_v31 = vpop.f32.mrf.mxu0  ;;  %v557_v51 = vpop.f32.mrf.mxu1 }
 0x120   : > { %v558_v54 = vadd.f32 %v557_v51, %v492_v31 }
 0x122   : > { %v516_v55 = vpop.f32.mrf.mxu2  ;;  %1012 = vst [vmem:[%s1783_s19 + $0xa8] sm:$0xff] %v558_v54  ;;  %v581_v56 = vpop.f32.mrf.mxu3  ;;  %775 = vmatmul.f32.gmra.mxu0 %v1744_v2  ;;  %840 = vmatmul.f32.gmra.mxu1 %v1746_v3 }
 0x123   : > { %v582_v48 = vadd.f32 %v581_v56, %v516_v55 }
 0x125   : > { %1036 = vst [vmem:[%s1783_s19 + $0x168] sm:$0xff] %v582_v48 }
 0x127   : > { %v731_v49 = vpop.f32.mrf.mxu0  ;;  %v796_v57 = vpop.f32.mrf.mxu1 }
 0x128   : > { %v797_v60 = vadd.f32 %v796_v57, %v731_v49 }
 0x12a   : > { %v601_v61 = vpop.f32.mrf.mxu2  ;;  %v666_v62 = vpop.f32.mrf.mxu3  ;;  %993 = vst [vmem:[%s1783_s19 + $0x10] sm:$0xff] %v797_v60 }
 0x12b   : > { %v667_v63 = vadd.f32 %v666_v62, %v601_v61 }
 0x12d   : > { %992 = vst [vmem:[%s1783_s19 + $0x8] sm:$0xff] %v667_v63 }
 0x12f   : > { %v734_v4 = vpop.f32.mrf.mxu0  ;;  %v799_v5 = vpop.f32.mrf.mxu1 }
 0x130   : > { %v800_v8 = vadd.f32 %v799_v5, %v734_v4 }
 0x132   : > { %v604_v2 = vpop.f32.mrf.mxu2  ;;  %v669_v9 = vpop.f32.mrf.mxu3  ;;  %996 = vst [vmem:[%s1783_s19 + $0x28] sm:$0xff] %v800_v8 }
 0x133   : > { %v670_v3 = vadd.f32 %v669_v9, %v604_v2 }
 0x135   : > { %995 = vst [vmem:[%s1783_s19 + $0x20] sm:$0xff] %v670_v3 }
 0x137   : > { %v737_v10 = vpop.f32.mrf.mxu0  ;;  %v802_v11 = vpop.f32.mrf.mxu1 }
 0x138   : > { %v803_v14 = vadd.f32 %v802_v11, %v737_v10 }
 0x13a   : > { %v607_v15 = vpop.f32.mrf.mxu2  ;;  %v672_v40 = vpop.f32.mrf.mxu3  ;;  %999 = vst [vmem:[%s1783_s19 + $0x40] sm:$0xff] %v803_v14 }
 0x13b   : > { %v673_v41 = vadd.f32 %v672_v40, %v607_v15 }
 0x13d   : > { %998 = vst [vmem:[%s1783_s19 + $0x38] sm:$0xff] %v673_v41 }
 0x13f   : > { %v740_v52 = vpop.f32.mrf.mxu0  ;;  %v805_v53 = vpop.f32.mrf.mxu1 }
 0x140   : > { %v806_v0 = vadd.f32 %v805_v53, %v740_v52 }
 0x142   : > { %v610_v1 = vpop.f32.mrf.mxu2  ;;  %v675_v12 = vpop.f32.mrf.mxu3  ;;  %1002 = vst [vmem:[%s1783_s19 + $0x58] sm:$0xff] %v806_v0 }
 0x143   : > { %v676_v13 = vadd.f32 %v675_v12, %v610_v1 }
 0x145   : > { %1001 = vst [vmem:[%s1783_s19 + $0x50] sm:$0xff] %v676_v13 }
 0x147   : > { %v743_v16 = vpop.f32.mrf.mxu0  ;;  %v808_v17 = vpop.f32.mrf.mxu1 }
 0x148   : > { %v809_v20 = vadd.f32 %v808_v17, %v743_v16 }
 0x14a   : > { %v613_v34 = vpop.f32.mrf.mxu2  ;;  %v678_v35 = vpop.f32.mrf.mxu3  ;;  %1005 = vst [vmem:[%s1783_s19 + $0x70] sm:$0xff] %v809_v20 }
 0x14b   : > { %v679_v21 = vadd.f32 %v678_v35, %v613_v34 }
 0x14d   : > { %1004 = vst [vmem:[%s1783_s19 + $0x68] sm:$0xff] %v679_v21 }
 0x14f   : > { %v746_v22 = vpop.f32.mrf.mxu0  ;;  %v811_v23 = vpop.f32.mrf.mxu1 }
 0x150   : > { %v812_v24 = vadd.f32 %v811_v23, %v746_v22 }
 0x152   : > { %v616_v46 = vpop.f32.mrf.mxu2  ;;  %v681_v47 = vpop.f32.mrf.mxu3  ;;  %1008 = vst [vmem:[%s1783_s19 + $0x88] sm:$0xff] %v812_v24 }
 0x153   : > { %v682_v25 = vadd.f32 %v681_v47, %v616_v46 }
 0x155   : > { %1007 = vst [vmem:[%s1783_s19 + $0x80] sm:$0xff] %v682_v25 }
 0x157   : > { %v749_v26 = vpop.f32.mrf.mxu0  ;;  %v814_v27 = vpop.f32.mrf.mxu1 }
 0x158   : > { %v815_v28 = vadd.f32 %v814_v27, %v749_v26 }
 0x15a   : > { %v619_v58 = vpop.f32.mrf.mxu2  ;;  %v684_v59 = vpop.f32.mrf.mxu3  ;;  %1011 = vst [vmem:[%s1783_s19 + $0xa0] sm:$0xff] %v815_v28 }
 0x15b   : > { %v685_v29 = vadd.f32 %v684_v59, %v619_v58 }
 0x15d   : > { %1010 = vst [vmem:[%s1783_s19 + $0x98] sm:$0xff] %v685_v29 }
 0x15f   : > { %v752_v32 = vpop.f32.mrf.mxu0  ;;  %v817_v33 = vpop.f32.mrf.mxu1 }
 0x160   : > { %v818_v36 = vadd.f32 %v817_v33, %v752_v32 }
 0x162   : > { %v622_v6 = vpop.f32.mrf.mxu2  ;;  %v687_v7 = vpop.f32.mrf.mxu3  ;;  %1014 = vst [vmem:[%s1783_s19 + $0xb8] sm:$0xff] %v818_v36 }
 0x163   : > { %v688_v37 = vadd.f32 %v687_v7, %v622_v6 }
 0x165   : > { %1013 = vst [vmem:[%s1783_s19 + $0xb0] sm:$0xff] %v688_v37 }
 0x167   : > { %v755_v38 = vpop.f32.mrf.mxu0  ;;  %v820_v39 = vpop.f32.mrf.mxu1 }
 0x168   : > { %v821_v42 = vadd.f32 %v820_v39, %v755_v38 }
 0x16a   : > { %v625_v18 = vpop.f32.mrf.mxu2  ;;  %v690_v19 = vpop.f32.mrf.mxu3  ;;  %1017 = vst [vmem:[%s1783_s19 + $0xd0] sm:$0xff] %v821_v42 }
 0x16b   : > { %v691_v43 = vadd.f32 %v690_v19, %v625_v18 }
 0x16d   : > { %1016 = vst [vmem:[%s1783_s19 + $0xc8] sm:$0xff] %v691_v43 }
 0x16f   : > { %v758_v44 = vpop.f32.mrf.mxu0  ;;  %v823_v45 = vpop.f32.mrf.mxu1 }
 0x170   : > { %v824_v50 = vadd.f32 %v823_v45, %v758_v44 }
 0x172   : > { %v628_v30 = vpop.f32.mrf.mxu2  ;;  %v693_v31 = vpop.f32.mrf.mxu3  ;;  %1020 = vst [vmem:[%s1783_s19 + $0xe8] sm:$0xff] %v824_v50 }
 0x173   : > { %v694_v51 = vadd.f32 %v693_v31, %v628_v30 }
 0x175   : > { %1019 = vst [vmem:[%s1783_s19 + $0xe0] sm:$0xff] %v694_v51 }
 0x177   : > { %v761_v54 = vpop.f32.mrf.mxu0  ;;  %v826_v55 = vpop.f32.mrf.mxu1 }
 0x178   : > { %v827_v56 = vadd.f32 %v826_v55, %v761_v54 }
 0x17a   : > { %v631_v48 = vpop.f32.mrf.mxu2  ;;  %v696_v49 = vpop.f32.mrf.mxu3  ;;  %1023 = vst [vmem:[%s1783_s19 + $0x100] sm:$0xff] %v827_v56 }
 0x17b   : > { %v697_v57 = vadd.f32 %v696_v49, %v631_v48 }
 0x17d   : > { %1022 = vst [vmem:[%s1783_s19 + $0xf8] sm:$0xff] %v697_v57 }
 0x17f   : > { %v764_v60 = vpop.f32.mrf.mxu0  ;;  %v829_v61 = vpop.f32.mrf.mxu1 }
 0x180   : > { %v830_v62 = vadd.f32 %v829_v61, %v764_v60 }
 0x182   : > { %v634_v63 = vpop.f32.mrf.mxu2  ;;  %v699_v4 = vpop.f32.mrf.mxu3  ;;  %1026 = vst [vmem:[%s1783_s19 + $0x118] sm:$0xff] %v830_v62 }
 0x183   : > { %v700_v5 = vadd.f32 %v699_v4, %v634_v63 }
 0x185   : > { %1025 = vst [vmem:[%s1783_s19 + $0x110] sm:$0xff] %v700_v5 }
 0x187   : > { %v767_v8 = vpop.f32.mrf.mxu0  ;;  %v832_v2 = vpop.f32.mrf.mxu1 }
 0x188   : > { %v833_v9 = vadd.f32 %v832_v2, %v767_v8 }
 0x18a   : > { %v637_v3 = vpop.f32.mrf.mxu2  ;;  %v702_v10 = vpop.f32.mrf.mxu3  ;;  %1029 = vst [vmem:[%s1783_s19 + $0x130] sm:$0xff] %v833_v9 }
 0x18b   : > { %v703_v11 = vadd.f32 %v702_v10, %v637_v3 }
 0x18d   : > { %1028 = vst [vmem:[%s1783_s19 + $0x128] sm:$0xff] %v703_v11 }
 0x18f   : > { %v770_v14 = vpop.f32.mrf.mxu0  ;;  %v835_v15 = vpop.f32.mrf.mxu1 }
 0x190   : > { %v836_v40 = vadd.f32 %v835_v15, %v770_v14 }
 0x192   : > { %v640_v41 = vpop.f32.mrf.mxu2  ;;  %v705_v52 = vpop.f32.mrf.mxu3  ;;  %1032 = vst [vmem:[%s1783_s19 + $0x148] sm:$0xff] %v836_v40 }
 0x193   : > { %v706_v53 = vadd.f32 %v705_v52, %v640_v41 }
 0x195   : > { %1031 = vst [vmem:[%s1783_s19 + $0x140] sm:$0xff] %v706_v53 }
 0x197   : > { %v773_v0 = vpop.f32.mrf.mxu0  ;;  %v838_v1 = vpop.f32.mrf.mxu1 }
 0x198   : > { %v839_v12 = vadd.f32 %v838_v1, %v773_v0 }
 0x19a   : > { %v643_v13 = vpop.f32.mrf.mxu2  ;;  %v708_v16 = vpop.f32.mrf.mxu3  ;;  %1035 = vst [vmem:[%s1783_s19 + $0x160] sm:$0xff] %v839_v12 }
 0x19b   : > { %v709_v17 = vadd.f32 %v708_v16, %v643_v13 }
 0x19d   : > { %1034 = vst [vmem:[%s1783_s19 + $0x158] sm:$0xff] %v709_v17 }
 0x19f   : > { %v776_v20 = vpop.f32.mrf.mxu0  ;;  %v841_v34 = vpop.f32.mrf.mxu1 }
 0x1a0   : > { %v842_v35 = vadd.f32 %v841_v34, %v776_v20 }
 0x1a2   : > { %v646_v21 = vpop.f32.mrf.mxu2  ;;  %v711_v22 = vpop.f32.mrf.mxu3  ;;  %1038 = vst [vmem:[%s1783_s19 + $0x178] sm:$0xff] %v842_v35 }
 0x1a3   : > { %v712_v23 = vadd.f32 %v711_v22, %v646_v21 }
 0x1a5   : > { %1037 = vst [vmem:[%s1783_s19 + $0x170] sm:$0xff] %v712_v23 }
 0x1a6   : > { %1381 = shalt.err (!%p1378_p0)
}
 0x1a7   : > { %s1445_s26 = smov 384   ;;  %s1446_s4 = smov 768  }
 0x1a8   : > { %s1447_s5 = smov 24  }
 0x1a9   : > { %1222 = dma.vmem_to_hbm [thread:$0]  (%p1541_p5), %s1056_s8, 6144, %s1058_s15, %s1040_s12, %s1445_s26, %s1446_s4, %s1447_s5  }
 0x1aa PF: > { %s1072_s17 = sand.u32 1, %s1420_s9   ;;  %p1233_p3 = pnand %p1169_p11, %p1512_p6 }
 0x1ab   : > { %s1073_s19 = scalar_lea.sflag [#allocation5], %s1072_s17 }
 0x1ac   : > { %p1234_p7 = pneg %p1233_p3 }
 0x1ae   : > { %1415 = dma.done.wait (%p1234_p7), %s1073_s19, 6144  }
 0x1af   : > { %1417 = vsyncadd (%p1234_p7), %s1073_s19, 4294961152  ;;  %s19_s14 = sadd.s32 1, %s1440_s14   ;;  %s1911_s9 = smov %s1424_s10 }
 0x1b0   : > { %p16_p9 = scmp.ge.s32.totalorder %s19_s14, 4   ;;  %s1912_s10 = smov %s1428_s11 }
 0x1b1   : > { %s1913_s11 = smov %s1550_s7  ;;  %s1914_s12 = smov %s1436_s13 }
 0x1b2   : > { %s1915_s13 = smov %s1917_s29  ;;  %18 = sbr.rel (!%p16_p9) target bundleno = 7 (0x7), region = 87 }
 0x1b7   :  { %1079 = vsyncpa [#allocation4], 1 }
 0x1b8   :  { %1081 = vsyncpa [#allocation4 + $0x1], 1 }
 0x1b9   :  { %1082 = vsyncpa [#allocation7], 1 }
 0x1ba   :  { %1084 = vsyncpa [#allocation7 + $0x1], 1 }
 0x1bb   :  { %1085 = vsyncpa [#allocation5], 1 }
 0x1bc   :  { %1087 = vsyncpa [#allocation5 + $0x1], 1 }

</bundles_post_ra>
